<compile_context>
chip_gen: v5e
topology: v5e:2x2
jax: 0.10.0
libtpu: 0.0.40
codegen_flags: <defaults>
</compile_context>

<pallas_src>
import functools

import numpy as np

import jax
import jax.numpy as jnp
from jax.experimental import pallas as pl
from jax.experimental.pallas import tpu as pltpu


def _round_up(x, m):
    return ((x + m - 1) // m) * m


def _discrete_latent_kernel(x_ref, g_ref, aux_ref, w1_ref, b1_ref, w2_ref,
                            b2_ref, logits_ref, latents_ref, *,
                            seg_shifts, d_pad):
    """One batch tile: MLP -> logits; flat-layout Gumbel-max one-hot sample."""
    # ---- MLP hot path (MXU): bf16 operands, f32 accumulation ----
    h = jnp.dot(x_ref[...], w1_ref[...],
                preferred_element_type=jnp.float32) + b1_ref[...]
    h = jnp.maximum(h, 0.0).astype(jnp.bfloat16)
    logits = jnp.dot(h, w2_ref[...],
                     preferred_element_type=jnp.float32) + b2_ref[...]
    logits_ref[...] = logits

    # ---- Gumbel-max sampling on the flat lane-dense (TB, Dp) layout ----
    aux = aux_ref[...]                # (2, Dp) f32 trace-time constants
    lane = aux[0:1, :]                # lane index (exact small ints in f32)
    segid = aux[1:2, :]               # categorical (segment) id per lane

    z = logits + g_ref[...]           # perturbed logits, f32

    # "Partner lane is in my segment" masks, one per roll offset.  Rolling the
    # segment-id row with the same offsets keeps the masks consistent with the
    # data rolls regardless of the hardware rotation direction.
    masks = []
    for sh in seg_shifts:
        for s in (sh, d_pad - sh):
            masks.append((s, pltpu.roll(segid, s, axis=1) == segid))

    neg = jnp.float32(-1e30)
    pos = jnp.float32(1e30)

    # Per-segment max of z, broadcast to every lane of the segment
    # (masked bidirectional doubling: XLU rolls + VPU max/select).
    zmax = z
    for s, same in masks:
        zmax = jnp.maximum(zmax,
                           jnp.where(same, pltpu.roll(zmax, s, axis=1), neg))

    # First lane index achieving the max (same tie-break as argmax).
    cand = jnp.where(z >= zmax, lane, pos)
    amin = cand
    for s, same in masks:
        amin = jnp.minimum(amin,
                           jnp.where(same, pltpu.roll(amin, s, axis=1), pos))

    one_hot = (lane == amin).astype(jnp.float32)

    # Forward value of one_hot + probs - stop_grad(probs) is exactly one_hot;
    # the straight-through gradient is added by the custom_vjp wrapper.
    latents_ref[...] = one_hot


def _discrete_latent_forward(x, w1, b1, w2, b2, gumbel, n_categoricals,
                             n_classes, batch_tile):
    """Pallas forward. x: (B, in_dim) f32. Returns (logits, latents), (B, K*C)."""
    batch, in_dim = x.shape
    hidden = w1.shape[1]
    k, c = n_categoricals, n_classes
    d = k * c
    assert w1.shape == (in_dim, hidden)
    assert b1.shape == (1, hidden)
    assert w2.shape == (hidden, d)
    assert b2.shape == (1, d)
    assert gumbel.shape == (batch, d)

    # Pad feature dims to 128 lanes (MXU native); pad batch to the tile.
    in_p = _round_up(in_dim, 128)
    hid_p = _round_up(hidden, 128)
    d_p = _round_up(d, 128)
    tb = _round_up(min(batch_tile, _round_up(batch, 8)), 8)
    b_p = _round_up(batch, tb)

    f32, bf16 = jnp.float32, jnp.bfloat16
    xp = jnp.pad(x.astype(bf16), ((0, b_p - batch), (0, in_p - in_dim)))
    gp = jnp.pad(gumbel.astype(f32), ((0, b_p - batch), (0, d_p - d)))
    w1p = jnp.pad(w1.astype(bf16), ((0, in_p - in_dim), (0, hid_p - hidden)))
    b1p = jnp.pad(b1.astype(f32), ((0, 0), (0, hid_p - hidden)))
    w2p = jnp.pad(w2.astype(bf16), ((0, hid_p - hidden), (0, d_p - d)))
    b2p = jnp.pad(b2.astype(f32), ((0, 0), (0, d_p - d)))

    # Per-lane metadata (built with numpy at trace time -> program constant):
    # row 0 = lane index, row 1 = categorical id; padded lanes each get a
    # unique id so they never mix with real categoricals.
    lane = np.arange(d_p)
    segid = np.where(lane < d, lane // c, lane)
    aux = jnp.asarray(np.stack([lane, segid]).astype(np.float32))  # (2, d_p)

    # Roll offsets for the in-segment doubling reduce: 1, 2, 4, ... (< C).
    seg_shifts = []
    s = 1
    while s < c:
        seg_shifts.append(s)
        s *= 2

    kernel = functools.partial(_discrete_latent_kernel,
                               seg_shifts=tuple(seg_shifts), d_pad=d_p)

    tile = lambda shape: pl.BlockSpec(shape, lambda i: (i, 0))      # batch-tiled
    resident = lambda shape: pl.BlockSpec(shape, lambda i: (0, 0))  # stays in VMEM

    logits_p, latents_p = pl.pallas_call(
        kernel,
        grid=(b_p // tb,),
        in_specs=[
            tile((tb, in_p)),         # x tile
            tile((tb, d_p)),          # gumbel noise tile
            resident((2, d_p)),       # lane / segment-id constants
            resident((in_p, hid_p)),  # W1 (resident)
            resident((1, hid_p)),     # b1
            resident((hid_p, d_p)),   # W2 (resident)
            resident((1, d_p)),       # b2
        ],
        out_specs=[
            tile((tb, d_p)),          # logits
            tile((tb, d_p)),          # latents (one-hot sample)
        ],
        out_shape=(
            jax.ShapeDtypeStruct((b_p, d_p), jnp.float32),
            jax.ShapeDtypeStruct((b_p, d_p), jnp.float32),
        ),
        compiler_params=pltpu.CompilerParams(
            dimension_semantics=("parallel",),
            # Explicit budget rather than the 32 MiB scoped default; re-derive
            # batch_tile (256 -> smaller) if this is hit on v7x (64 MiB VMEM).
            vmem_limit_bytes=64 * 1024 * 1024,
        ),
    )(xp, gp, aux, w1p, b1p, w2p, b2p)

    return logits_p[:batch, :d], latents_p[:batch, :d]


def make_discrete_latent_dist(n_categoricals, n_classes, *, batch_tile=256):
    """Returns apply(x, w1, b1, w2, b2, gumbel) -> (logits, latents).

    Forward runs the Pallas kernel; the straight-through-estimator gradient
    (one_hot + probs - stop_grad(probs), back through the MLP) is supplied by a
    pure-JAX custom VJP since pallas_call is not auto-differentiable.
    """
    k, c = n_categoricals, n_classes

    def _forward(x, w1, b1, w2, b2, gumbel):
        return _discrete_latent_forward(x, w1, b1, w2, b2, gumbel, k, c,
                                        batch_tile)

    @jax.custom_vjp
    def apply(x, w1, b1, w2, b2, gumbel):
        return _forward(x, w1, b1, w2, b2, gumbel)

    def fwd(x, w1, b1, w2, b2, gumbel):
        logits, latents = _forward(x, w1, b1, w2, b2, gumbel)
        return (logits, latents), (x, w1, b1, w2, b2, latents)

    def bwd(res, cts):
        x, w1, b1, w2, b2, one_hot = res
        g_logits, g_latents = cts

        def reference(x, w1, b1, w2, b2):
            h = jnp.maximum(jnp.dot(x, w1) + b1, 0.0)
            logits = jnp.dot(h, w2) + b2
            probs = jax.nn.softmax(
                logits.reshape(logits.shape[0], k, c), axis=-1
            ).reshape(logits.shape[0], k * c)
            latents = one_hot + probs - jax.lax.stop_gradient(probs)
            return logits, latents

        _, vjp = jax.vjp(reference, x, w1, b1, w2, b2)
        dx, dw1, db1, dw2, db2 = vjp((g_logits, g_latents))
        return dx, dw1, db1, dw2, db2, jnp.zeros_like(one_hot)

    apply.defvjp(fwd, bwd)
    return apply


def init_params(key, in_dim, hidden, out_dim):
    """Mimics PyTorch nn.Linear default init (uniform +-1/sqrt(fan_in))."""
    k1, k2, k3, k4 = jax.random.split(key, 4)
    lim1 = 1.0 / jnp.sqrt(in_dim)
    lim2 = 1.0 / jnp.sqrt(hidden)
    w1 = jax.random.uniform(k1, (in_dim, hidden), jnp.float32, -lim1, lim1)
    b1 = jax.random.uniform(k2, (1, hidden), jnp.float32, -lim1, lim1)
    w2 = jax.random.uniform(k3, (hidden, out_dim), jnp.float32, -lim2, lim2)
    b2 = jax.random.uniform(k4, (1, out_dim), jnp.float32, -lim2, lim2)
    return w1, b1, w2, b2


if __name__ == "__main__":
    # Small shapes consistent with the module (posterior: in_dim = deter+embed).
    batch = 6
    in_dim = 40
    hidden = 32
    n_categoricals = 4
    n_classes = 8
    out_dim = n_categoricals * n_classes

    key = jax.random.PRNGKey(0)
    kx, kp, kg = jax.random.split(key, 3)
    x = jax.random.normal(kx, (batch, in_dim), jnp.float32)
    w1, b1, w2, b2 = init_params(kp, in_dim, hidden, out_dim)
    # Sampling noise for OneHotCategorical via the Gumbel-max trick.
    gumbel = jax.random.gumbel(kg, (batch, out_dim), jnp.float32)

    dld = make_discrete_latent_dist(n_categoricals, n_classes, batch_tile=256)

    logits, latents = jax.jit(dld)(x, w1, b1, w2, b2, gumbel)
    jax.block_until_ready((logits, latents))

    assert logits.shape == (batch, out_dim)
    assert latents.shape == (batch, out_dim)

    # latents value == sampled one-hot: entries in {0,1}, exactly one per cat.
    lt = latents.reshape(batch, n_categoricals, n_classes)
    assert bool(jnp.all((latents == 0.0) | (latents == 1.0)))
    assert bool(jnp.allclose(lt.sum(-1), 1.0))

    # The selected class must be the Gumbel-max of the kernel's own logits.
    z = (logits + gumbel).reshape(batch, n_categoricals, n_classes)
    picked = (lt * z).sum(-1)
    assert bool(jnp.all(picked >= z.max(-1) - 1e-4))

    # Logits close to a pure-f32 reference (loose tol: bf16 matmul operands).
    logits_ref = jnp.maximum(x @ w1 + b1, 0.0) @ w2 + b2
    assert float(jnp.max(jnp.abs(logits - logits_ref))) < 0.3

    # Straight-through gradients flow via the custom VJP (pure-JAX backward).
    def loss_fn(w1, b1, w2, b2):
        lg, la = dld(x, w1, b1, w2, b2, gumbel)
        target = jnp.arange(out_dim, dtype=jnp.float32)
        return jnp.mean(lg * lg) + jnp.mean(la * target)

    grads = jax.grad(loss_fn, argnums=(0, 1, 2, 3))(w1, b1, w2, b2)
    jax.block_until_ready(grads)
    assert all(bool(jnp.all(jnp.isfinite(g))) for g in grads)

    print("KERNEL_OK")
</pallas_src>

<mosaic_0001>
module attributes {stable_mosaic.version = 11 : i64} {
  func.func @_discrete_latent_kernel(%arg0: i32, %arg1: memref<8x128xbf16, #tpu.memory_space<vmem>>, %arg2: memref<8x128xf32, #tpu.memory_space<vmem>>, %arg3: memref<2x128xf32, #tpu.memory_space<vmem>>, %arg4: memref<128x128xbf16, #tpu.memory_space<vmem>>, %arg5: memref<1x128xf32, #tpu.memory_space<vmem>>, %arg6: memref<128x128xbf16, #tpu.memory_space<vmem>>, %arg7: memref<1x128xf32, #tpu.memory_space<vmem>>, %arg8: memref<8x128xf32, #tpu.memory_space<vmem>>, %arg9: memref<8x128xf32, #tpu.memory_space<vmem>>) attributes {dimension_semantics = [#tpu.dimension_semantics<parallel>], iteration_bounds = array<i64: 1>, scalar_prefetch = 0 : i64, scratch_operands = 0 : i64, tpu.core_type = #tpu.core_type<tc>, window_params = [{transform_indices = @transform_0, window_bounds = array<i64: 8, 128>}, {transform_indices = @transform_1, window_bounds = array<i64: 8, 128>}, {pipeline_mode = #tpu.pipeline_mode<synchronous>, transform_indices = @transform_2, window_bounds = array<i64: 2, 128>}, {pipeline_mode = #tpu.pipeline_mode<synchronous>, transform_indices = @transform_3, window_bounds = array<i64: 128, 128>}, {pipeline_mode = #tpu.pipeline_mode<synchronous>, transform_indices = @transform_4, window_bounds = array<i64: 1, 128>}, {pipeline_mode = #tpu.pipeline_mode<synchronous>, transform_indices = @transform_5, window_bounds = array<i64: 128, 128>}, {pipeline_mode = #tpu.pipeline_mode<synchronous>, transform_indices = @transform_6, window_bounds = array<i64: 1, 128>}, {transform_indices = @transform_7, window_bounds = array<i64: 8, 128>}, {transform_indices = @transform_8, window_bounds = array<i64: 8, 128>}]} {
    %c0 = arith.constant 0 : index
    %c0_0 = arith.constant 0 : index
    %0 = vector.load %arg1[%c0, %c0_0] : memref<8x128xbf16, #tpu.memory_space<vmem>>, vector<8x128xbf16>
    %c0_1 = arith.constant 0 : index
    %c0_2 = arith.constant 0 : index
    %1 = vector.load %arg4[%c0_1, %c0_2] : memref<128x128xbf16, #tpu.memory_space<vmem>>, vector<128x128xbf16>
    %cst = arith.constant dense<0.000000e+00> : vector<8x128xf32>
    %2 = tpu.matmul %0, %1, %cst {dimension_numbers = #tpu.dot_dimension_numbers<[1], [0], [0], [1], [0, 0, 1, 1], [], []>} : vector<8x128xbf16>, vector<128x128xbf16>, vector<8x128xf32> -> vector<8x128xf32>
    %c0_3 = arith.constant 0 : index
    %c0_4 = arith.constant 0 : index
    %3 = vector.load %arg5[%c0_3, %c0_4] : memref<1x128xf32, #tpu.memory_space<vmem>>, vector<1x128xf32>
    %4 = vector.broadcast %3 : vector<1x128xf32> to vector<8x128xf32>
    %5 = arith.addf %2, %4 : vector<8x128xf32>
    %cst_5 = arith.constant 0.000000e+00 : f32
    %6 = vector.broadcast %cst_5 : f32 to vector<8x128xf32>
    %7 = arith.maximumf %5, %6 : vector<8x128xf32>
    %8 = arith.truncf %7 : vector<8x128xf32> to vector<8x128xbf16>
    %c0_6 = arith.constant 0 : index
    %c0_7 = arith.constant 0 : index
    %9 = vector.load %arg6[%c0_6, %c0_7] : memref<128x128xbf16, #tpu.memory_space<vmem>>, vector<128x128xbf16>
    %cst_8 = arith.constant dense<0.000000e+00> : vector<8x128xf32>
    %10 = tpu.matmul %8, %9, %cst_8 {dimension_numbers = #tpu.dot_dimension_numbers<[1], [0], [0], [1], [0, 0, 1, 1], [], []>} : vector<8x128xbf16>, vector<128x128xbf16>, vector<8x128xf32> -> vector<8x128xf32>
    %c0_9 = arith.constant 0 : index
    %c0_10 = arith.constant 0 : index
    %11 = vector.load %arg7[%c0_9, %c0_10] : memref<1x128xf32, #tpu.memory_space<vmem>>, vector<1x128xf32>
    %12 = vector.broadcast %11 : vector<1x128xf32> to vector<8x128xf32>
    %13 = arith.addf %10, %12 : vector<8x128xf32>
    %c0_11 = arith.constant 0 : index
    %c0_12 = arith.constant 0 : index
    %14 = vector.load %arg8[%c0_11, %c0_12] : memref<8x128xf32, #tpu.memory_space<vmem>>, vector<8x128xf32>
    tpu.vector_store %arg8[%c0_11, %c0_12], %13 {strides = array<i32>} : memref<8x128xf32, #tpu.memory_space<vmem>>, vector<8x128xf32>,
    %c0_13 = arith.constant 0 : index
    %c0_14 = arith.constant 0 : index
    %15 = vector.load %arg3[%c0_13, %c0_14] : memref<2x128xf32, #tpu.memory_space<vmem>>, vector<2x128xf32>
    %16 = vector.extract_strided_slice %15 {offsets = [0, 0], sizes = [1, 128], strides = [1, 1]} : vector<2x128xf32> to vector<1x128xf32>
    %17 = vector.extract_strided_slice %15 {offsets = [1, 0], sizes = [1, 128], strides = [1, 1]} : vector<2x128xf32> to vector<1x128xf32>
    %c0_15 = arith.constant 0 : index
    %c0_16 = arith.constant 0 : index
    %18 = vector.load %arg2[%c0_15, %c0_16] : memref<8x128xf32, #tpu.memory_space<vmem>>, vector<8x128xf32>
    %19 = arith.addf %13, %18 : vector<8x128xf32>
    %c1_i32 = arith.constant 1 : i32
    %20 = tpu.dynamic_rotate %17 by %c1_i32 dim 1 : vector<1x128xf32>, i32 -> vector<1x128xf32>
    %21 = arith.cmpf oeq, %20, %17 : vector<1x128xf32>
    %c127_i32 = arith.constant 127 : i32
    %22 = tpu.dynamic_rotate %17 by %c127_i32 dim 1 : vector<1x128xf32>, i32 -> vector<1x128xf32>
    %23 = arith.cmpf oeq, %22, %17 : vector<1x128xf32>
    %c2_i32 = arith.constant 2 : i32
    %24 = tpu.dynamic_rotate %17 by %c2_i32 dim 1 : vector<1x128xf32>, i32 -> vector<1x128xf32>
    %25 = arith.cmpf oeq, %24, %17 : vector<1x128xf32>
    %c126_i32 = arith.constant 126 : i32
    %26 = tpu.dynamic_rotate %17 by %c126_i32 dim 1 : vector<1x128xf32>, i32 -> vector<1x128xf32>
    %27 = arith.cmpf oeq, %26, %17 : vector<1x128xf32>
    %c4_i32 = arith.constant 4 : i32
    %28 = tpu.dynamic_rotate %17 by %c4_i32 dim 1 : vector<1x128xf32>, i32 -> vector<1x128xf32>
    %29 = arith.cmpf oeq, %28, %17 : vector<1x128xf32>
    %c124_i32 = arith.constant 124 : i32
    %30 = tpu.dynamic_rotate %17 by %c124_i32 dim 1 : vector<1x128xf32>, i32 -> vector<1x128xf32>
    %31 = arith.cmpf oeq, %30, %17 : vector<1x128xf32>
    %c1_i32_17 = arith.constant 1 : i32
    %32 = tpu.dynamic_rotate %19 by %c1_i32_17 dim 1 : vector<8x128xf32>, i32 -> vector<8x128xf32>
    %cst_18 = arith.constant -1.000000e+30 : f32
    %33 = vector.shape_cast %21 : vector<1x128xi1> to vector<1x128xi1>
    %34 = vector.broadcast %33 : vector<1x128xi1> to vector<8x128xi1>
    %35 = vector.broadcast %cst_18 : f32 to vector<8x128xf32>
    %36 = arith.select %34, %32, %35 : vector<8x128xi1>, vector<8x128xf32>
    %37 = arith.maximumf %19, %36 : vector<8x128xf32>
    %c127_i32_19 = arith.constant 127 : i32
    %38 = tpu.dynamic_rotate %37 by %c127_i32_19 dim 1 : vector<8x128xf32>, i32 -> vector<8x128xf32>
    %cst_20 = arith.constant -1.000000e+30 : f32
    %39 = vector.shape_cast %23 : vector<1x128xi1> to vector<1x128xi1>
    %40 = vector.broadcast %39 : vector<1x128xi1> to vector<8x128xi1>
    %41 = vector.broadcast %cst_20 : f32 to vector<8x128xf32>
    %42 = arith.select %40, %38, %41 : vector<8x128xi1>, vector<8x128xf32>
    %43 = arith.maximumf %37, %42 : vector<8x128xf32>
    %c2_i32_21 = arith.constant 2 : i32
    %44 = tpu.dynamic_rotate %43 by %c2_i32_21 dim 1 : vector<8x128xf32>, i32 -> vector<8x128xf32>
    %cst_22 = arith.constant -1.000000e+30 : f32
    %45 = vector.shape_cast %25 : vector<1x128xi1> to vector<1x128xi1>
    %46 = vector.broadcast %45 : vector<1x128xi1> to vector<8x128xi1>
    %47 = vector.broadcast %cst_22 : f32 to vector<8x128xf32>
    %48 = arith.select %46, %44, %47 : vector<8x128xi1>, vector<8x128xf32>
    %49 = arith.maximumf %43, %48 : vector<8x128xf32>
    %c126_i32_23 = arith.constant 126 : i32
    %50 = tpu.dynamic_rotate %49 by %c126_i32_23 dim 1 : vector<8x128xf32>, i32 -> vector<8x128xf32>
    %cst_24 = arith.constant -1.000000e+30 : f32
    %51 = vector.shape_cast %27 : vector<1x128xi1> to vector<1x128xi1>
    %52 = vector.broadcast %51 : vector<1x128xi1> to vector<8x128xi1>
    %53 = vector.broadcast %cst_24 : f32 to vector<8x128xf32>
    %54 = arith.select %52, %50, %53 : vector<8x128xi1>, vector<8x128xf32>
    %55 = arith.maximumf %49, %54 : vector<8x128xf32>
    %c4_i32_25 = arith.constant 4 : i32
    %56 = tpu.dynamic_rotate %55 by %c4_i32_25 dim 1 : vector<8x128xf32>, i32 -> vector<8x128xf32>
    %cst_26 = arith.constant -1.000000e+30 : f32
    %57 = vector.shape_cast %29 : vector<1x128xi1> to vector<1x128xi1>
    %58 = vector.broadcast %57 : vector<1x128xi1> to vector<8x128xi1>
    %59 = vector.broadcast %cst_26 : f32 to vector<8x128xf32>
    %60 = arith.select %58, %56, %59 : vector<8x128xi1>, vector<8x128xf32>
    %61 = arith.maximumf %55, %60 : vector<8x128xf32>
    %c124_i32_27 = arith.constant 124 : i32
    %62 = tpu.dynamic_rotate %61 by %c124_i32_27 dim 1 : vector<8x128xf32>, i32 -> vector<8x128xf32>
    %cst_28 = arith.constant -1.000000e+30 : f32
    %63 = vector.shape_cast %31 : vector<1x128xi1> to vector<1x128xi1>
    %64 = vector.broadcast %63 : vector<1x128xi1> to vector<8x128xi1>
    %65 = vector.broadcast %cst_28 : f32 to vector<8x128xf32>
    %66 = arith.select %64, %62, %65 : vector<8x128xi1>, vector<8x128xf32>
    %67 = arith.maximumf %61, %66 : vector<8x128xf32>
    %68 = arith.cmpf oge, %19, %67 : vector<8x128xf32>
    %cst_29 = arith.constant 1.000000e+30 : f32
    %69 = vector.shape_cast %16 : vector<1x128xf32> to vector<1x128xf32>
    %70 = vector.broadcast %69 : vector<1x128xf32> to vector<8x128xf32>
    %71 = vector.broadcast %cst_29 : f32 to vector<8x128xf32>
    %72 = arith.select %68, %70, %71 : vector<8x128xi1>, vector<8x128xf32>
    %c1_i32_30 = arith.constant 1 : i32
    %73 = tpu.dynamic_rotate %72 by %c1_i32_30 dim 1 : vector<8x128xf32>, i32 -> vector<8x128xf32>
    %cst_31 = arith.constant 1.000000e+30 : f32
    %74 = vector.shape_cast %21 : vector<1x128xi1> to vector<1x128xi1>
    %75 = vector.broadcast %74 : vector<1x128xi1> to vector<8x128xi1>
    %76 = vector.broadcast %cst_31 : f32 to vector<8x128xf32>
    %77 = arith.select %75, %73, %76 : vector<8x128xi1>, vector<8x128xf32>
    %78 = arith.minimumf %72, %77 : vector<8x128xf32>
    %c127_i32_32 = arith.constant 127 : i32
    %79 = tpu.dynamic_rotate %78 by %c127_i32_32 dim 1 : vector<8x128xf32>, i32 -> vector<8x128xf32>
    %cst_33 = arith.constant 1.000000e+30 : f32
    %80 = vector.shape_cast %23 : vector<1x128xi1> to vector<1x128xi1>
    %81 = vector.broadcast %80 : vector<1x128xi1> to vector<8x128xi1>
    %82 = vector.broadcast %cst_33 : f32 to vector<8x128xf32>
    %83 = arith.select %81, %79, %82 : vector<8x128xi1>, vector<8x128xf32>
    %84 = arith.minimumf %78, %83 : vector<8x128xf32>
    %c2_i32_34 = arith.constant 2 : i32
    %85 = tpu.dynamic_rotate %84 by %c2_i32_34 dim 1 : vector<8x128xf32>, i32 -> vector<8x128xf32>
    %cst_35 = arith.constant 1.000000e+30 : f32
    %86 = vector.shape_cast %25 : vector<1x128xi1> to vector<1x128xi1>
    %87 = vector.broadcast %86 : vector<1x128xi1> to vector<8x128xi1>
    %88 = vector.broadcast %cst_35 : f32 to vector<8x128xf32>
    %89 = arith.select %87, %85, %88 : vector<8x128xi1>, vector<8x128xf32>
    %90 = arith.minimumf %84, %89 : vector<8x128xf32>
    %c126_i32_36 = arith.constant 126 : i32
    %91 = tpu.dynamic_rotate %90 by %c126_i32_36 dim 1 : vector<8x128xf32>, i32 -> vector<8x128xf32>
    %cst_37 = arith.constant 1.000000e+30 : f32
    %92 = vector.shape_cast %27 : vector<1x128xi1> to vector<1x128xi1>
    %93 = vector.broadcast %92 : vector<1x128xi1> to vector<8x128xi1>
    %94 = vector.broadcast %cst_37 : f32 to vector<8x128xf32>
    %95 = arith.select %93, %91, %94 : vector<8x128xi1>, vector<8x128xf32>
    %96 = arith.minimumf %90, %95 : vector<8x128xf32>
    %c4_i32_38 = arith.constant 4 : i32
    %97 = tpu.dynamic_rotate %96 by %c4_i32_38 dim 1 : vector<8x128xf32>, i32 -> vector<8x128xf32>
    %cst_39 = arith.constant 1.000000e+30 : f32
    %98 = vector.shape_cast %29 : vector<1x128xi1> to vector<1x128xi1>
    %99 = vector.broadcast %98 : vector<1x128xi1> to vector<8x128xi1>
    %100 = vector.broadcast %cst_39 : f32 to vector<8x128xf32>
    %101 = arith.select %99, %97, %100 : vector<8x128xi1>, vector<8x128xf32>
    %102 = arith.minimumf %96, %101 : vector<8x128xf32>
    %c124_i32_40 = arith.constant 124 : i32
    %103 = tpu.dynamic_rotate %102 by %c124_i32_40 dim 1 : vector<8x128xf32>, i32 -> vector<8x128xf32>
    %cst_41 = arith.constant 1.000000e+30 : f32
    %104 = vector.shape_cast %31 : vector<1x128xi1> to vector<1x128xi1>
    %105 = vector.broadcast %104 : vector<1x128xi1> to vector<8x128xi1>
    %106 = vector.broadcast %cst_41 : f32 to vector<8x128xf32>
    %107 = arith.select %105, %103, %106 : vector<8x128xi1>, vector<8x128xf32>
    %108 = arith.minimumf %102, %107 : vector<8x128xf32>
    %109 = vector.broadcast %16 : vector<1x128xf32> to vector<8x128xf32>
    %110 = arith.cmpf oeq, %109, %108 : vector<8x128xf32>
    %111 = arith.extui %110 : vector<8x128xi1> to vector<8x128xi32>
    %112 = arith.sitofp %111 : vector<8x128xi32> to vector<8x128xf32>
    %c0_42 = arith.constant 0 : index
    %c0_43 = arith.constant 0 : index
    %113 = vector.load %arg9[%c0_42, %c0_43] : memref<8x128xf32, #tpu.memory_space<vmem>>, vector<8x128xf32>
    tpu.vector_store %arg9[%c0_42, %c0_43], %112 {strides = array<i32>} : memref<8x128xf32, #tpu.memory_space<vmem>>, vector<8x128xf32>,
    return
  }
  func.func @transform_0(%arg0: i32) -> (i32, i32) {
    %c0_i32 = arith.constant 0 : i32
    %c0_i32_0 = arith.constant 0 : i32
    return %arg0, %c0_i32 : i32, i32
  }
  func.func @transform_1(%arg0: i32) -> (i32, i32) {
    %c0_i32 = arith.constant 0 : i32
    %c0_i32_0 = arith.constant 0 : i32
    return %arg0, %c0_i32 : i32, i32
  }
  func.func @transform_2(%arg0: i32) -> (i32, i32) {
    %c0_i32 = arith.constant 0 : i32
    %c0_i32_0 = arith.constant 0 : i32
    %c0_i32_1 = arith.constant 0 : i32
    return %c0_i32, %c0_i32_0 : i32, i32
  }
  func.func @transform_3(%arg0: i32) -> (i32, i32) {
    %c0_i32 = arith.constant 0 : i32
    %c0_i32_0 = arith.constant 0 : i32
    %c0_i32_1 = arith.constant 0 : i32
    return %c0_i32, %c0_i32_0 : i32, i32
  }
  func.func @transform_4(%arg0: i32) -> (i32, i32) {
    %c0_i32 = arith.constant 0 : i32
    %c0_i32_0 = arith.constant 0 : i32
    %c0_i32_1 = arith.constant 0 : i32
    return %c0_i32, %c0_i32_0 : i32, i32
  }
  func.func @transform_5(%arg0: i32) -> (i32, i32) {
    %c0_i32 = arith.constant 0 : i32
    %c0_i32_0 = arith.constant 0 : i32
    %c0_i32_1 = arith.constant 0 : i32
    return %c0_i32, %c0_i32_0 : i32, i32
  }
  func.func @transform_6(%arg0: i32) -> (i32, i32) {
    %c0_i32 = arith.constant 0 : i32
    %c0_i32_0 = arith.constant 0 : i32
    %c0_i32_1 = arith.constant 0 : i32
    return %c0_i32, %c0_i32_0 : i32, i32
  }
  func.func @transform_7(%arg0: i32) -> (i32, i32) {
    %c0_i32 = arith.constant 0 : i32
    %c0_i32_0 = arith.constant 0 : i32
    return %arg0, %c0_i32 : i32, i32
  }
  func.func @transform_8(%arg0: i32) -> (i32, i32) {
    %c0_i32 = arith.constant 0 : i32
    %c0_i32_0 = arith.constant 0 : i32
    return %arg0, %c0_i32 : i32, i32
  }
}

</mosaic_0001>

<bundles_post_ra>
// kernel: apply.1
= control target key start
LH: loop header
LB: loop body
LE: loop exit
PB: predicated region body
PF: predicated region fallthrough
CT: control target
= control target key end

     0   :  { %14 = vsyncpa [#allocation3], 0  ;;  %s683_s0 = inlined_call_operand.vmem [shape: bf16[8,128], index: 0, kind: input, shape index: {}]   ;;  %s684_s1 = inlined_call_operand.vmem [shape: f32[8,128], index: 1, kind: input, shape index: {}]   ;;  %s685_s2 = inlined_call_operand.vmem [shape: f32[2,128], index: 2, kind: input, shape index: {}]   ;;  %s686_s3 = inlined_call_operand.vmem [shape: bf16[128,128], index: 3, kind: input, shape index: {}]   ;;  %s687_s4 = inlined_call_operand.vmem [shape: f32[1,128], index: 4, kind: input, shape index: {}]   ;;  %s688_s5 = inlined_call_operand.vmem [shape: bf16[128,128], index: 5, kind: input, shape index: {}]   ;;  %s689_s6 = inlined_call_operand.vmem [shape: f32[1,128], index: 6, kind: input, shape index: {}]   ;;  %s690_s7 = inlined_call_operand.hbm [shape: f32[8,128], index: 7, kind: output, shape index: {0}]   ;;  %s691_s8 = inlined_call_operand.hbm [shape: f32[8,128], index: 8, kind: output, shape index: {1}]  }
   0x1   :  { %v397_v0 = vld [vmem:[%s686_s3 + $0x38] sm:$0xff]  ;;  %v396_v1 = vld [vmem:[%s686_s3 + $0x30] sm:$0xff]  ;;  %v395_v4 = vld [vmem:[%s686_s3 + $0x28] sm:$0xff] }
   0x2   :  { %99 = vmatpush.bf16.msra.mxu0 %v397_v0  ;;  %v405_v2 = vld [vmem:[%s688_s5 + $0x38] sm:$0xff]  ;;  %v404_v3 = vld [vmem:[%s688_s5 + $0x30] sm:$0xff] }
   0x3   :  { %182 = vmatpush.bf16.msra.mxu1 %v405_v2 }
   0x6   :  { %100 = vmatpush.bf16.msra.mxu0 %v396_v1 }
   0x7   :  { %15 = vsyncpa [#allocation5], 0  ;;  %183 = vmatpush.bf16.msra.mxu1 %v404_v3  ;;  %v403_v5 = vld [vmem:[%s688_s5 + $0x28] sm:$0xff]  ;;  %v394_v6 = vld [vmem:[%s686_s3 + $0x20] sm:$0xff]  ;;  %v473_v32 = vmov 0   ;;  %s474_s23 = smov 126  }
   0x8   :  { %v402_v7 = vld [vmem:[%s688_s5 + $0x20] sm:$0xff]  ;;  %v393_v8 = vld [vmem:[%s686_s3 + $0x18] sm:$0xff]  ;;  %v392_v10 = vld [vmem:[%s686_s3 + $0x10] sm:$0xff]  ;;  %s300_s26 = sshll.u32 %s690_s7, 4  ;;  %s477_s27 = smov [#allocation2]   ;;  %s301_s26 = int_to_ptr.hbm [resolvable:$true] %s300_s26 }
   0x9   :  { %v401_v9 = vld [vmem:[%s688_s5 + $0x18] sm:$0xff]  ;;  %v400_v11 = vld [vmem:[%s688_s5 + $0x10] sm:$0xff]  ;;  %v391_v12 = vld [vmem:[%s686_s3 + $0x8] sm:$0xff]  ;;  %s298_s28 = sshll.u32 %s477_s27, 4  ;;  %s478_s29 = smov [#allocation4]   ;;  %s299_s28 = int_to_ptr.vmem [resolvable:$true] %s298_s28 }
   0xa   :  { %101 = vmatpush.bf16.msra.mxu0 %v395_v4  ;;  %v390_v13 = vld [vmem:[%s686_s3] sm:$0xff]  ;;  %v399_v15 = vld [vmem:[%s688_s5 + $0x8] sm:$0xff]  ;;  %s309_s30 = sshll.u32 %s478_s29, 4  ;;  %s311_s10 = sshll.u32 %s691_s8, 4  ;;  %s310_s30 = int_to_ptr.vmem [resolvable:$true] %s309_s30  ;;  %s312_s10 = int_to_ptr.hbm [resolvable:$true] %s311_s10 }
   0xb   :  { %184 = vmatpush.bf16.msra.mxu1 %v403_v5  ;;  %v30_v14 = vld [vmem:[%s683_s0] sm:$0xf]  ;;  %s470_s0 = smov 1  }
   0xc   :  { %v398_v16 = vld [vmem:[%s688_s5] sm:$0xff]  ;;  %s471_s5 = smov 127  }
   0xd   :  { %v579_v17 = vld [vmem:[%s685_s2] sm:$0x3]  ;;  %s472_s2 = smov 2  }
   0xe   :  { %102 = vmatpush.bf16.msra.mxu0 %v394_v6  ;;  %v582_v18 = vrot.slane %v579_v17, 1  ;;  %v416_v19 = vld [vmem:[%s687_s4] ss:$0 sm:$0xff] }
   0xf   :  { %185 = vmatpush.bf16.msra.mxu1 %v402_v7  ;;  %v417_v25 = vld [vmem:[%s689_s6] ss:$0 sm:$0xff]  ;;  %s476_s6 = smov 124  }
  0x10   :  { %202 = vrot.lane.b32.xlu0 %v582_v18, %s470_s0  ;;  %205 = vrot.lane.b32.xlu1 %v582_v18, %s471_s5  ;;  %v197_v27 = vld [vmem:[%s684_s1] sm:$0xff]  ;;  %s475_s1 = smov 4  }
  0x11   :  { %208 = vrot.lane.b32.xlu2 %v582_v18, %s472_s2 }
  0x12   :  { %103 = vmatpush.bf16.msra.mxu0 %v393_v8 }
  0x13   :  { %186 = vmatpush.bf16.msra.mxu1 %v401_v9  ;;  %v263_v9 = vperm.slane %v579_v17, 0 }
  0x16   :  { %104 = vmatpush.bf16.msra.mxu0 %v392_v10 }
  0x17   :  { %187 = vmatpush.bf16.msra.mxu1 %v400_v11 }
  0x1a   :  { %105 = vmatpush.bf16.msra.mxu0 %v391_v12 }
  0x1b   :  { %188 = vmatpush.bf16.msra.mxu1 %v399_v15 }
  0x1e   :  { %106 = vmatpush.bf16.msra.mxu0 %v390_v13 }
  0x1f   :  { %189 = vmatpush.bf16.msra.mxu1 %v398_v16 }
  0x21   :  { %107 = vmatmul.bf16.vlgmr.msra.gmra.mxu0 %v30_v14 }
  0x6b   :  { %v209_v46 = vpop.permute.xlu2 %208 }
  0x6c   :  { %vm210_vm4 = vcmp.eq.f32.partialorder %v209_v46, %v582_v18 }
  0x6d   :  { %v236_v47 = vsel %vm210_vm4, 1, %v473_v32 }
  0x6e   :  { %v237_v48 = vperm.slane %v236_v47, 0 }
  0x70   :  { %vm625_vm5 = vcmp.eq.s32.totalorder %v237_v48, 1 }
  0x82   :  { %v203_v31 = vpop.permute.xlu0 %202  ;;  %v206_v39 = vpop.permute.xlu1 %205 }
  0x83   :  { %vm204_vm0 = vcmp.eq.f32.partialorder %v203_v31, %v582_v18  ;;  %vm207_vm2 = vcmp.eq.f32.partialorder %v206_v39, %v582_v18 }
  0x84   :  { %v222_v33 = vsel %vm204_vm0, 1, %v473_v32  ;;  %v229_v40 = vsel %vm207_vm2, 1, %v473_v32 }
  0x85   :  { %v223_v34 = vperm.slane %v222_v33, 0  ;;  %v230_v41 = vperm.slane %v229_v40, 0 }
  0x87   :  { %vm606_vm1 = vcmp.eq.s32.totalorder %v223_v34, 1  ;;  %vm615_vm3 = vcmp.eq.s32.totalorder %v230_v41, 1 }
  0x9e   :  { %v108_v20 = vpop.f32.mrf.mxu0 }
  0x9f   :  { %v109_v21 = vadd.f32 %v416_v19, %v108_v20 }
  0xa1   :  { %v112_v22 = vmax.f32 %v109_v21, 0.0 }
  0xa3   :  { %v113_v23 = vpack.c.bf16 %v112_v22, %v112_v22 }
  0xa5   :  { %190 = vmatmul.bf16.vlgmr.msra.gmra.mxu1 %v113_v23 }
  0xa6   :  { %v110_v24 = vpop.f32.mrf.mxu0 }
 0x122   :  { %v191_v26 = vpop.f32.mrf.mxu1 }
 0x123   :  { %v192_v28 = vadd.f32 %v417_v25, %v191_v26 }
 0x125   :  { %v599_v29 = vadd.f32 %v197_v27, %v192_v28  ;;  %195 = vst [vmem:[#allocation2] sm:$0xff] %v192_v28 }
 0x126   :  { %303 = dma.vmem_to_hbm [thread:$0]  %s299_s28, 128, %s301_s26, [#allocation3]  }
 0x127   :  { %220 = vrot.lane.b32.xlu0 %v599_v29, %s470_s0 }
 0x12a   :  { %v193_v30 = vpop.f32.mrf.mxu1 }
 0x12b   :  { %v479_v30 = vmov 0.0  }
 0x12f   :  { %211 = vrot.lane.b32.xlu0 %v582_v18, %s474_s23 }
 0x199   :  { %v221_v36 = vpop.permute.xlu0 %220 }
 0x19a   :  { %v225_v37 = vsel %vm606_vm1, %v221_v36, -1e+30 }
 0x19b   :  { %v226_v38 = vmax.f32 %v599_v29, %v225_v37 }
 0x19d   :  { %227 = vrot.lane.b32.xlu1 %v226_v38, %s471_s5 }
 0x1a1   :  { %v212_v53 = vpop.permute.xlu0 %211 }
 0x1a2   :  { %vm213_vm6 = vcmp.eq.f32.partialorder %v212_v53, %v582_v18 }
 0x1a3   :  { %v243_v54 = vsel %vm213_vm6, 1, %v473_v32 }
 0x1a4   :  { %v244_v55 = vperm.slane %v243_v54, 0 }
 0x1a6   :  { %vm635_vm7 = vcmp.eq.s32.totalorder %v244_v55, 1 }
 0x20f   :  { %v228_v43 = vpop.permute.xlu1 %227 }
 0x210   :  { %v232_v44 = vsel %vm615_vm3, %v228_v43, -1e+30 }
 0x211   :  { %v233_v45 = vmax.f32 %v226_v38, %v232_v44 }
 0x213   :  { %234 = vrot.lane.b32.xlu2 %v233_v45, %s472_s2 }
 0x21b   :  { %214 = vrot.lane.b32.xlu2 %v582_v18, %s475_s1 }
 0x26d   :  { %v235_v50 = vpop.permute.xlu2 %234 }
 0x26e   :  { %v239_v51 = vsel %vm625_vm5, %v235_v50, -1e+30 }
 0x26f   :  { %v240_v52 = vmax.f32 %v233_v45, %v239_v51 }
 0x271   :  { %241 = vrot.lane.b32.xlu1 %v240_v52, %s474_s23 }
 0x275   :  { %v215_v60 = vpop.permute.xlu2 %214 }
 0x276   :  { %vm216_vm8 = vcmp.eq.f32.partialorder %v215_v60, %v582_v18 }
 0x277   :  { %v250_v61 = vsel %vm216_vm8, 1, %v473_v32 }
 0x278   :  { %v251_v62 = vperm.slane %v250_v61, 0 }
 0x279   :  { %217 = vrot.lane.b32.xlu1 %v582_v18, %s476_s6 }
 0x27a   :  { %vm643_vm9 = vcmp.eq.s32.totalorder %v251_v62, 1 }
 0x2e3   :  { %v242_v57 = vpop.permute.xlu1 %241 }
 0x2e4   :  { %v246_v58 = vsel %vm635_vm7, %v242_v57, -1e+30 }
 0x2e5   :  { %v247_v59 = vmax.f32 %v240_v52, %v246_v58 }
 0x2e7   :  { %248 = vrot.lane.b32.xlu0 %v247_v59, %s475_s1 }
 0x2eb   :  { %v218_v3 = vpop.permute.xlu1 %217 }
 0x2ec   :  { %vm219_vm10 = vcmp.eq.f32.partialorder %v218_v3, %v582_v18 }
 0x2ed   :  { %v257_v4 = vsel %vm219_vm10, 1, %v473_v32 }
 0x2ee   :  { %v258_v5 = vperm.slane %v257_v4, 0 }
 0x2f0   :  { %vm651_vm11 = vcmp.eq.s32.totalorder %v258_v5, 1 }
 0x359   :  { %v249_v0 = vpop.permute.xlu0 %248 }
 0x35a   :  { %v253_v1 = vsel %vm643_vm9, %v249_v0, -1e+30 }
 0x35b   :  { %v254_v2 = vmax.f32 %v247_v59, %v253_v1 }
 0x35d   :  { %255 = vrot.lane.b32.xlu2 %v254_v2, %s476_s6 }
 0x3b7   :  { %v256_v7 = vpop.permute.xlu2 %255 }
 0x3b8   :  { %v260_v8 = vsel %vm651_vm11, %v256_v7, -1e+30 }
 0x3b9   :  { %v261_v10 = vmax.f32 %v254_v2, %v260_v8 }
 0x3bb   :  { %vm262_vm12 = vcmp.ge.f32.partialorder %v599_v29, %v261_v10 }
 0x3bc   :  { %v264_v11 = vsel %vm262_vm12, %v263_v9, 1e+30 }
 0x3bd   :  { %265 = vrot.lane.b32.xlu0 %v264_v11, %s470_s0 }
 0x42f   :  { %v266_v12 = vpop.permute.xlu0 %265 }
 0x430   :  { %v267_v13 = vsel %vm606_vm1, %v266_v12, 1e+30 }
 0x431   :  { %v268_v14 = vmin.f32 %v264_v11, %v267_v13 }
 0x433   :  { %269 = vrot.lane.b32.xlu1 %v268_v14, %s471_s5 }
 0x4a5   :  { %v270_v15 = vpop.permute.xlu1 %269 }
 0x4a6   :  { %v271_v16 = vsel %vm615_vm3, %v270_v15, 1e+30 }
 0x4a7   :  { %v272_v18 = vmin.f32 %v268_v14, %v271_v16 }
 0x4a9   :  { %273 = vrot.lane.b32.xlu2 %v272_v18, %s472_s2 }
 0x503   :  { %v274_v17 = vpop.permute.xlu2 %273 }
 0x504   :  { %v275_v19 = vsel %vm625_vm5, %v274_v17, 1e+30 }
 0x505   :  { %v276_v20 = vmin.f32 %v272_v18, %v275_v19 }
 0x507   :  { %277 = vrot.lane.b32.xlu0 %v276_v20, %s474_s23 }
 0x579   :  { %v278_v21 = vpop.permute.xlu0 %277 }
 0x57a   :  { %v279_v22 = vsel %vm635_vm7, %v278_v21, 1e+30 }
 0x57b   :  { %v280_v23 = vmin.f32 %v276_v20, %v279_v22 }
 0x57d   :  { %281 = vrot.lane.b32.xlu1 %v280_v23, %s475_s1 }
 0x5ef   :  { %v282_v24 = vpop.permute.xlu1 %281 }
 0x5f0   :  { %v283_v25 = vsel %vm643_vm9, %v282_v24, 1e+30 }
 0x5f1   :  { %v284_v26 = vmin.f32 %v280_v23, %v283_v25 }
 0x5f3   :  { %285 = vrot.lane.b32.xlu2 %v284_v26, %s476_s6 }
 0x64d   :  { %v286_v27 = vpop.permute.xlu2 %285 }
 0x64e   :  { %v287_v28 = vsel %vm651_vm11, %v286_v27, 1e+30 }
 0x64f   :  { %v288_v29 = vmin.f32 %v284_v26, %v287_v28 }
 0x651   :  { %vm289_vm13 = vcmp.eq.f32.partialorder %v263_v9, %v288_v29 }
 0x652   :  { %v389_v31 = vsel %vm289_vm13, 1.0, %v479_v30 }
 0x653   :  { %292 = vst [vmem:[#allocation4] sm:$0xff] %v389_v31 }
 0x654   :  { %314 = dma.vmem_to_hbm [thread:$0]  %s310_s30, 128, %s312_s10, [#allocation5]  }
 0x655   :  { %466 = dma.done.wait [#allocation3], 128  }
 0x656   :  { %467 = vsyncadd [#allocation3], 4294967168 }
 0x657   :  { %468 = dma.done.wait [#allocation5], 128  }
 0x658   :  { %469 = vsyncadd [#allocation5], 4294967168 }
 0x659   :  { %323 = vsyncpa [#allocation3], 1 }
 0x65a   :  { %324 = vsyncpa [#allocation5], 1 }

</bundles_post_ra>
